<compile_context>
chip_gen: v7x
topology: tpu7x:2x2x1
jax: 0.10.0
libtpu: 0.0.40
codegen_flags: <defaults>
</compile_context>

<pallas_src>
import functools

import jax
import jax.numpy as jnp
from jax import lax
from jax.experimental import pallas as pl
from jax.experimental.pallas import tpu as pltpu


def _pick_batch_block(B, plane_bytes):
    """Batch block size: amortize per-step overhead without blowing VMEM while
    keeping >= 2 grid steps (v7x megacore) whenever B >= 2."""
    budget = 8 * 1024 * 1024            # target bytes for double-buffered in+out blocks
    cap = max(1, budget // (4 * plane_bytes))
    if B >= 2:
        cap = min(cap, B // 2)          # >= 2 "parallel" grid steps
    cap = max(1, min(cap, B))
    bb = 1
    for d in range(1, int(cap) + 1):    # largest divisor of B <= cap
        if B % d == 0:
            bb = d
    return bb


def _dwconv_kernel(x_ref, w_ref, b_ref, o_ref, xp_ref, *,
                   BB, C, H, L, Lpad, lane_aligned):
    """One grid step = BB batch planes.

    x_ref : (BB, H, L)   input planes, L = W*C (lane-dense, W folded into lanes)
    w_ref : (9, L)       folded per-tap weights, row k = tap (kh, kw) = (k//3, k%3)
    b_ref : (1, L)       folded bias
    o_ref : (BB, H, L)   output planes
    xp_ref: (H+16, WP)   f32 scratch; planes live at rows [8, 8+H)
    """
    WP = xp_ref.shape[1]

    if lane_aligned:
        # Single plane stored at 128-aligned base C; +/-C tap offsets stay aligned.
        plane_base = C
        bases = (0, C, 2 * C)             # read column base for kw = 0, 1, 2
    else:
        # Three planes: centre at 0, right-shifted (x[l-C]) at Lpad,
        # left-shifted (x[l+C]) at 2*Lpad.  All read bases are 128-aligned.
        plane_base = 0
        bases = (Lpad, 0, 2 * Lpad)

    zrow = jnp.zeros((1, WP), jnp.float32)
    zstrip = jnp.zeros((H, C), jnp.float32)

    # Zero the halo rows every grid step (no cross-step / cross-core scratch
    # state is assumed -- required for megacore safety).
    xp_ref[7:8, :] = zrow
    xp_ref[8 + H:9 + H, :] = zrow
    if lane_aligned:
        # Side lane-halos are never overwritten by the plane store below, so
        # zeroing them once per step is enough.
        xp_ref[8:8 + H, 0:C] = zstrip
        xp_ref[8:8 + H, C + L:2 * C + L] = zstrip

    # Weight/bias rows: loaded once per grid step, reused for every plane.
    # TODO(synk): switch to stride-0 sublane-broadcast reads of the weight rows
    # so the implicit (1,L)->(H,L) broadcasts become pure load addressing.
    w_rows = [w_ref[k:k + 1, :] for k in range(9)]
    b_row = b_ref[0:1, :]

    for bb in range(BB):
        x = x_ref[bb, :, :].astype(jnp.float32)

        # Aligned store of the centre plane (rows [8, 8+H) are sublane-aligned).
        xp_ref[8:8 + H, plane_base:plane_base + L] = x

        if not lane_aligned:
            # Lane shift done ONCE per column offset (not once per tap):
            #   roll(x, +C)[.., l]  == x[.., (l - C) % L]   -> kw = 0 taps
            #   roll(x, L-C)[.., l] == x[.., (l + C) % L]   -> kw = 2 taps
            xr = pltpu.roll(x, shift=C, axis=1)
            xl = pltpu.roll(x, shift=L - C, axis=1)
            xp_ref[8:8 + H, Lpad:Lpad + L] = xr
            xp_ref[8:8 + H, 2 * Lpad:2 * Lpad + L] = xl
            # Kill the roll wrap-around (these strips are overwritten by the
            # plane stores above, so they must be re-zeroed per plane).
            xp_ref[8:8 + H, Lpad:Lpad + C] = zstrip
            xp_ref[8:8 + H, 2 * Lpad + L - C:2 * Lpad + L] = zstrip

        # Centre tap + bias initialise the accumulator (no zeros pass); x is
        # already live, so the (1,1) tap needs no scratch read.
        acc = x * w_rows[4] + b_row

        # Remaining 8 taps: fully lane-aligned reads; only the row offset and
        # the 128-aligned column base vary.
        for kh in range(3):
            for kw in range(3):
                if kh == 1 and kw == 1:
                    continue
                k = kh * 3 + kw
                base = bases[kw]
                tap = xp_ref[7 + kh:7 + kh + H, base:base + L]
                acc = acc + tap * w_rows[k]

        o_ref[bb, :, :] = acc.astype(o_ref.dtype)


def dwconv_pallas(x, H, W, weight, bias):
    """Depthwise 3x3 conv, stride 1, pad 1, groups=C, with bias.

    x      : (B, N, C) with N == H*W.  HBM I/O stays in x.dtype (pass bf16 to
             halve HBM traffic); accumulation is f32 inside the kernel.
    weight : (3, 3, C) per-channel taps.  A PyTorch depthwise Conv2d weight of
             shape (C, 1, 3, 3) maps to this via w[:, 0].permute(1, 2, 0).
    bias   : (C,)
    returns: (B, N, C) in x.dtype
    """
    B, N, C = x.shape
    assert N == H * W, "sequence length must equal H*W"
    L = W * C
    Lpad = ((L + 127) // 128) * 128
    lane_aligned = (C % 128 == 0)
    scratch_w = (2 * C + L) if lane_aligned else (3 * Lpad)
    scratch_h = H + 16                      # plane at rows [8, 8+H), halo rows 7 / 8+H

    # (B, N, C) -> (B, H, W*C): pure reinterpretation of the same memory layout.
    x_folded = x.reshape(B, H, L)
    # Fold the 3x3xC taps / bias to lane vectors of length W*C (once, tiny).
    w_folded = jnp.tile(weight.astype(jnp.float32), (1, 1, W)).reshape(9, L)
    b_folded = jnp.tile(bias.astype(jnp.float32), W).reshape(1, L)

    plane_bytes = H * L * x.dtype.itemsize
    BB = _pick_batch_block(B, plane_bytes)

    # VMEM limit from actual need (double-buffered in/out blocks + weights +
    # scratch), capped at 48 MiB so v7x (64 MiB physical) keeps >= 25% headroom.
    need = (4 * BB * plane_bytes            # in + out blocks, double-buffered
            + 2 * (10 * L * 4)              # folded weights + bias
            + scratch_h * scratch_w * 4)    # padded f32 scratch
    vmem_limit = max(32 * 1024 * 1024,
                     min(int(need * 1.5) + (2 << 20), 48 * 1024 * 1024))

    kernel = functools.partial(
        _dwconv_kernel, BB=BB, C=C, H=H, L=L, Lpad=Lpad,
        lane_aligned=lane_aligned)

    out = pl.pallas_call(
        kernel,
        out_shape=jax.ShapeDtypeStruct((B, H, L), x.dtype),
        grid_spec=pltpu.PrefetchScalarGridSpec(
            num_scalar_prefetch=0,
            grid=(B // BB,),
            in_specs=[
                pl.BlockSpec((BB, H, L), lambda b: (b, 0, 0)),
                pl.BlockSpec((9, L), lambda b: (0, 0)),
                pl.BlockSpec((1, L), lambda b: (0, 0)),
            ],
            out_specs=pl.BlockSpec((BB, H, L), lambda b: (b, 0, 0)),
            scratch_shapes=[pltpu.VMEM((scratch_h, scratch_w), jnp.float32)],
        ),
        compiler_params=pltpu.CompilerParams(
            dimension_semantics=("parallel",),
            vmem_limit_bytes=vmem_limit,
        ),
    )(x_folded, w_folded, b_folded)

    # TODO(synk): for B == 1 (or planes far larger than VMEM) add a second
    # "parallel" H-tile grid axis with a carried row halo so both v7x
    # TensorCores stay busy; every PVTv2 stage shape fits the current scheme.
    return out.reshape(B, N, C)


def dwconv_reference(x, H, W, weight, bias):
    """Pure-JAX reference (depthwise conv via feature_group_count)."""
    B, N, C = x.shape
    x_nhwc = x.reshape(B, H, W, C)
    k = weight.reshape(3, 3, 1, C)   # HWIO with 1 input channel per group
    y = lax.conv_general_dilated(
        x_nhwc.astype(jnp.float32), k.astype(jnp.float32),
        window_strides=(1, 1), padding=((1, 1), (1, 1)),
        dimension_numbers=("NHWC", "HWIO", "NHWC"),
        feature_group_count=C)
    y = y + bias.reshape(1, 1, 1, C)
    return y.reshape(B, N, C).astype(x.dtype)


if __name__ == "__main__":
    def run_case(B, H, W, C, io_dtype, atol, rtol):
        N = H * W
        key = jax.random.PRNGKey(0)
        kx, kw_, kb = jax.random.split(key, 3)
        x = jax.random.normal(kx, (B, N, C), dtype=jnp.float32)
        weight = jax.random.normal(kw_, (3, 3, C), dtype=jnp.float32) * 0.1
        bias = jax.random.normal(kb, (C,), dtype=jnp.float32) * 0.1

        x_io = x.astype(io_dtype)
        out = jax.block_until_ready(dwconv_pallas(x_io, H, W, weight, bias))
        ref = dwconv_reference(x_io.astype(jnp.float32), H, W, weight, bias)

        assert out.shape == (B, N, C)
        assert out.dtype == x_io.dtype
        ok = jnp.allclose(out.astype(jnp.float32), ref.astype(jnp.float32),
                          atol=atol, rtol=rtol)
        assert ok, f"mismatch vs reference for {(B, H, W, C, str(io_dtype))}"

    # C % 128 != 0 -> roll-based lane-realignment path, f32 HBM I/O.
    run_case(B=2, H=16, W=16, C=32, io_dtype=jnp.float32, atol=1e-5, rtol=1e-5)
    # Same shape, bf16 HBM I/O (f32 scratch + accumulation inside the kernel).
    run_case(B=2, H=16, W=16, C=32, io_dtype=jnp.bfloat16, atol=5e-2, rtol=5e-2)
    # C % 128 == 0 -> direct aligned-offset path (no rolls).
    run_case(B=2, H=8, W=8, C=128, io_dtype=jnp.float32, atol=1e-5, rtol=1e-5)

    print("KERNEL_OK")
</pallas_src>

<mosaic_0001>
module attributes {stable_mosaic.version = 11 : i64} {
  func.func @_dwconv_kernel(%arg0: i32, %arg1: memref<1x16x512xf32, #tpu.memory_space<vmem>>, %arg2: memref<9x512xf32, #tpu.memory_space<vmem>>, %arg3: memref<1x512xf32, #tpu.memory_space<vmem>>, %arg4: memref<1x16x512xf32, #tpu.memory_space<vmem>>, %arg5: memref<32x1536xf32, #tpu.memory_space<vmem>>) attributes {dimension_semantics = [#tpu.dimension_semantics<parallel>], iteration_bounds = array<i64: 2>, scalar_prefetch = 0 : i64, scratch_operands = 1 : i64, tpu.core_type = #tpu.core_type<tc>, window_params = [{transform_indices = @transform_0, window_bounds = array<i64: 1, 16, 512>}, {pipeline_mode = #tpu.pipeline_mode<synchronous>, transform_indices = @transform_1, window_bounds = array<i64: 9, 512>}, {pipeline_mode = #tpu.pipeline_mode<synchronous>, transform_indices = @transform_2, window_bounds = array<i64: 1, 512>}, {transform_indices = @transform_3, window_bounds = array<i64: 1, 16, 512>}]} {
    %cst = arith.constant 0.000000e+00 : f32
    %0 = vector.broadcast %cst : f32 to vector<1x1536xf32>
    %cst_0 = arith.constant 0.000000e+00 : f32
    %1 = vector.broadcast %cst_0 : f32 to vector<16x32xf32>
    %c7 = arith.constant 7 : index
    %c0 = arith.constant 0 : index
    %2 = vector.load %arg5[%c7, %c0] : memref<32x1536xf32, #tpu.memory_space<vmem>>, vector<1x1536xf32>
    tpu.vector_store %arg5[%c7, %c0], %0 {strides = array<i32>} : memref<32x1536xf32, #tpu.memory_space<vmem>>, vector<1x1536xf32>,
    %c24 = arith.constant 24 : index
    %c0_1 = arith.constant 0 : index
    %3 = vector.load %arg5[%c24, %c0_1] : memref<32x1536xf32, #tpu.memory_space<vmem>>, vector<1x1536xf32>
    tpu.vector_store %arg5[%c24, %c0_1], %0 {strides = array<i32>} : memref<32x1536xf32, #tpu.memory_space<vmem>>, vector<1x1536xf32>,
    %c0_2 = arith.constant 0 : index
    %c0_3 = arith.constant 0 : index
    %4 = vector.load %arg2[%c0_2, %c0_3] : memref<9x512xf32, #tpu.memory_space<vmem>>, vector<1x512xf32>
    %c1 = arith.constant 1 : index
    %c0_4 = arith.constant 0 : index
    %5 = vector.load %arg2[%c1, %c0_4] : memref<9x512xf32, #tpu.memory_space<vmem>>, vector<1x512xf32>
    %c2 = arith.constant 2 : index
    %c0_5 = arith.constant 0 : index
    %6 = vector.load %arg2[%c2, %c0_5] : memref<9x512xf32, #tpu.memory_space<vmem>>, vector<1x512xf32>
    %c3 = arith.constant 3 : index
    %c0_6 = arith.constant 0 : index
    %7 = vector.load %arg2[%c3, %c0_6] : memref<9x512xf32, #tpu.memory_space<vmem>>, vector<1x512xf32>
    %c4 = arith.constant 4 : index
    %c0_7 = arith.constant 0 : index
    %8 = vector.load %arg2[%c4, %c0_7] : memref<9x512xf32, #tpu.memory_space<vmem>>, vector<1x512xf32>
    %c5 = arith.constant 5 : index
    %c0_8 = arith.constant 0 : index
    %9 = vector.load %arg2[%c5, %c0_8] : memref<9x512xf32, #tpu.memory_space<vmem>>, vector<1x512xf32>
    %c6 = arith.constant 6 : index
    %c0_9 = arith.constant 0 : index
    %10 = vector.load %arg2[%c6, %c0_9] : memref<9x512xf32, #tpu.memory_space<vmem>>, vector<1x512xf32>
    %c7_10 = arith.constant 7 : index
    %c0_11 = arith.constant 0 : index
    %11 = vector.load %arg2[%c7_10, %c0_11] : memref<9x512xf32, #tpu.memory_space<vmem>>, vector<1x512xf32>
    %c8 = arith.constant 8 : index
    %c0_12 = arith.constant 0 : index
    %12 = vector.load %arg2[%c8, %c0_12] : memref<9x512xf32, #tpu.memory_space<vmem>>, vector<1x512xf32>
    %c0_13 = arith.constant 0 : index
    %c0_14 = arith.constant 0 : index
    %13 = vector.load %arg3[%c0_13, %c0_14] : memref<1x512xf32, #tpu.memory_space<vmem>>, vector<1x512xf32>
    %c0_15 = arith.constant 0 : index
    %c0_16 = arith.constant 0 : index
    %c0_17 = arith.constant 0 : index
    %14 = vector.load %arg1[%c0_15, %c0_16, %c0_17] : memref<1x16x512xf32, #tpu.memory_space<vmem>>, vector<1x16x512xf32>
    %15 = vector.shape_cast %14 : vector<1x16x512xf32> to vector<16x512xf32>
    %c8_18 = arith.constant 8 : index
    %c0_19 = arith.constant 0 : index
    %16 = vector.load %arg5[%c8_18, %c0_19] : memref<32x1536xf32, #tpu.memory_space<vmem>>, vector<16x512xf32>
    tpu.vector_store %arg5[%c8_18, %c0_19], %15 {strides = array<i32>} : memref<32x1536xf32, #tpu.memory_space<vmem>>, vector<16x512xf32>,
    %c32_i32 = arith.constant 32 : i32
    %17 = tpu.dynamic_rotate %15 by %c32_i32 dim 1 : vector<16x512xf32>, i32 -> vector<16x512xf32>
    %c480_i32 = arith.constant 480 : i32
    %18 = tpu.dynamic_rotate %15 by %c480_i32 dim 1 : vector<16x512xf32>, i32 -> vector<16x512xf32>
    %c8_20 = arith.constant 8 : index
    %c512 = arith.constant 512 : index
    %19 = vector.load %arg5[%c8_20, %c512] : memref<32x1536xf32, #tpu.memory_space<vmem>>, vector<16x512xf32>
    tpu.vector_store %arg5[%c8_20, %c512], %17 {strides = array<i32>} : memref<32x1536xf32, #tpu.memory_space<vmem>>, vector<16x512xf32>,
    %c8_21 = arith.constant 8 : index
    %c1024 = arith.constant 1024 : index
    %20 = vector.load %arg5[%c8_21, %c1024] : memref<32x1536xf32, #tpu.memory_space<vmem>>, vector<16x512xf32>
    tpu.vector_store %arg5[%c8_21, %c1024], %18 {strides = array<i32>} : memref<32x1536xf32, #tpu.memory_space<vmem>>, vector<16x512xf32>,
    %c8_22 = arith.constant 8 : index
    %c512_23 = arith.constant 512 : index
    %21 = vector.load %arg5[%c8_22, %c512_23] : memref<32x1536xf32, #tpu.memory_space<vmem>>, vector<16x32xf32>
    tpu.vector_store %arg5[%c8_22, %c512_23], %1 {strides = array<i32>} : memref<32x1536xf32, #tpu.memory_space<vmem>>, vector<16x32xf32>,
    %c8_24 = arith.constant 8 : index
    %c1504 = arith.constant 1504 : index
    %22 = vector.load %arg5[%c8_24, %c1504] : memref<32x1536xf32, #tpu.memory_space<vmem>>, vector<16x32xf32>
    tpu.vector_store %arg5[%c8_24, %c1504], %1 {strides = array<i32>} : memref<32x1536xf32, #tpu.memory_space<vmem>>, vector<16x32xf32>,
    %23 = vector.broadcast %8 : vector<1x512xf32> to vector<16x512xf32>
    %24 = arith.mulf %15, %23 : vector<16x512xf32>
    %25 = vector.broadcast %13 : vector<1x512xf32> to vector<16x512xf32>
    %26 = arith.addf %24, %25 : vector<16x512xf32>
    %c7_25 = arith.constant 7 : index
    %c512_26 = arith.constant 512 : index
    %27 = vector.load %arg5[%c7_25, %c512_26] : memref<32x1536xf32, #tpu.memory_space<vmem>>, vector<16x512xf32>
    %28 = vector.broadcast %4 : vector<1x512xf32> to vector<16x512xf32>
    %29 = arith.mulf %27, %28 : vector<16x512xf32>
    %30 = arith.addf %26, %29 : vector<16x512xf32>
    %c7_27 = arith.constant 7 : index
    %c0_28 = arith.constant 0 : index
    %31 = vector.load %arg5[%c7_27, %c0_28] : memref<32x1536xf32, #tpu.memory_space<vmem>>, vector<16x512xf32>
    %32 = vector.broadcast %5 : vector<1x512xf32> to vector<16x512xf32>
    %33 = arith.mulf %31, %32 : vector<16x512xf32>
    %34 = arith.addf %30, %33 : vector<16x512xf32>
    %c7_29 = arith.constant 7 : index
    %c1024_30 = arith.constant 1024 : index
    %35 = vector.load %arg5[%c7_29, %c1024_30] : memref<32x1536xf32, #tpu.memory_space<vmem>>, vector<16x512xf32>
    %36 = vector.broadcast %6 : vector<1x512xf32> to vector<16x512xf32>
    %37 = arith.mulf %35, %36 : vector<16x512xf32>
    %38 = arith.addf %34, %37 : vector<16x512xf32>
    %c8_31 = arith.constant 8 : index
    %c512_32 = arith.constant 512 : index
    %39 = vector.load %arg5[%c8_31, %c512_32] : memref<32x1536xf32, #tpu.memory_space<vmem>>, vector<16x512xf32>
    %40 = vector.broadcast %7 : vector<1x512xf32> to vector<16x512xf32>
    %41 = arith.mulf %39, %40 : vector<16x512xf32>
    %42 = arith.addf %38, %41 : vector<16x512xf32>
    %c8_33 = arith.constant 8 : index
    %c1024_34 = arith.constant 1024 : index
    %43 = vector.load %arg5[%c8_33, %c1024_34] : memref<32x1536xf32, #tpu.memory_space<vmem>>, vector<16x512xf32>
    %44 = vector.broadcast %9 : vector<1x512xf32> to vector<16x512xf32>
    %45 = arith.mulf %43, %44 : vector<16x512xf32>
    %46 = arith.addf %42, %45 : vector<16x512xf32>
    %c9 = arith.constant 9 : index
    %c512_35 = arith.constant 512 : index
    %47 = vector.load %arg5[%c9, %c512_35] : memref<32x1536xf32, #tpu.memory_space<vmem>>, vector<16x512xf32>
    %48 = vector.broadcast %10 : vector<1x512xf32> to vector<16x512xf32>
    %49 = arith.mulf %47, %48 : vector<16x512xf32>
    %50 = arith.addf %46, %49 : vector<16x512xf32>
    %c9_36 = arith.constant 9 : index
    %c0_37 = arith.constant 0 : index
    %51 = vector.load %arg5[%c9_36, %c0_37] : memref<32x1536xf32, #tpu.memory_space<vmem>>, vector<16x512xf32>
    %52 = vector.broadcast %11 : vector<1x512xf32> to vector<16x512xf32>
    %53 = arith.mulf %51, %52 : vector<16x512xf32>
    %54 = arith.addf %50, %53 : vector<16x512xf32>
    %c9_38 = arith.constant 9 : index
    %c1024_39 = arith.constant 1024 : index
    %55 = vector.load %arg5[%c9_38, %c1024_39] : memref<32x1536xf32, #tpu.memory_space<vmem>>, vector<16x512xf32>
    %56 = vector.broadcast %12 : vector<1x512xf32> to vector<16x512xf32>
    %57 = arith.mulf %55, %56 : vector<16x512xf32>
    %58 = arith.addf %54, %57 : vector<16x512xf32>
    %c0_40 = arith.constant 0 : index
    %c0_41 = arith.constant 0 : index
    %c0_42 = arith.constant 0 : index
    %59 = vector.load %arg4[%c0_40, %c0_41, %c0_42] : memref<1x16x512xf32, #tpu.memory_space<vmem>>, vector<1x16x512xf32>
    %60 = vector.shape_cast %59 : vector<1x16x512xf32> to vector<16x512xf32>
    %61 = vector.shape_cast %58 : vector<16x512xf32> to vector<1x16x512xf32>
    tpu.vector_store %arg4[%c0_40, %c0_41, %c0_42], %61 {strides = array<i32>} : memref<1x16x512xf32, #tpu.memory_space<vmem>>, vector<1x16x512xf32>,
    return
  }
  func.func @transform_0(%arg0: i32) -> (i32, i32, i32) {
    %c0_i32 = arith.constant 0 : i32
    %c0_i32_0 = arith.constant 0 : i32
    %c0_i32_1 = arith.constant 0 : i32
    return %arg0, %c0_i32, %c0_i32_0 : i32, i32, i32
  }
  func.func @transform_1(%arg0: i32) -> (i32, i32) {
    %c0_i32 = arith.constant 0 : i32
    %c0_i32_0 = arith.constant 0 : i32
    %c0_i32_1 = arith.constant 0 : i32
    return %c0_i32, %c0_i32_0 : i32, i32
  }
  func.func @transform_2(%arg0: i32) -> (i32, i32) {
    %c0_i32 = arith.constant 0 : i32
    %c0_i32_0 = arith.constant 0 : i32
    %c0_i32_1 = arith.constant 0 : i32
    return %c0_i32, %c0_i32_0 : i32, i32
  }
  func.func @transform_3(%arg0: i32) -> (i32, i32, i32) {
    %c0_i32 = arith.constant 0 : i32
    %c0_i32_0 = arith.constant 0 : i32
    %c0_i32_1 = arith.constant 0 : i32
    return %arg0, %c0_i32, %c0_i32_0 : i32, i32, i32
  }
}

</mosaic_0001>

<bundles_post_ra>
// kernel: tpu_custom_call.1
= control target key start
LH: loop header
LB: loop body
LE: loop exit
PB: predicated region body
PF: predicated region fallthrough
CT: control target
= control target key end

     0   :  { %8 = vsyncpa [#allocation4], 0  ;;  %s2307_s0 = inlined_call_operand.hbm [shape: f32[2,16,512], index: 0, kind: input, shape index: {}]   ;;  %s2308_s1 = inlined_call_operand.hbm [shape: f32[9,512], index: 1, kind: input, shape index: {}]   ;;  %s2309_s2 = inlined_call_operand.vmem [shape: f32[1,512], index: 2, kind: input, shape index: {}]   ;;  %s2310_s3 = inlined_call_operand.hbm [shape: f32[2,16,512], index: 3, kind: output, shape index: {}]  }
   0x1   :  { %10 = vsyncpa [#allocation4 + $0x1], 0 }
   0x2   :  { %11 = vsyncpa [#allocation7], 0 }
   0x3   :  { %12 = vsyncpa [#allocation5], 0 }
   0x4   :  { %14 = vsyncpa [#allocation5 + $0x1], 0  ;;  %s1369_s12 = smov 0   ;;  %s1371_s13 = smov 0  }
   0x5   :  { %s1373_s14 = smov 0   ;;  %s1375_s15 = smov 0  }
   0x6 LB: > { %s1390_s16 = sadd.s32 4294967295, %s1338_s15   ;;  %s1129_s17 = sadd.s32 4294967294, %s1338_s15   ;;  %s1338_s15 = sphi %s1375_s15, %s2438_s15   ;;  %s1334_s14 = sphi %s1373_s14, %s2437_s14   ;;  %s1330_s13 = sphi %s1371_s13, %s2436_s13   ;;  %s1326_s12 = sphi %s1369_s12, %s2435_s12  }
   0x7   : > { %p40_p0 = scmp.ne.s32.totalorder %s1330_s13, %s1326_s12  ;;  %p2311_p1 = scmp.eq.s32.totalorder %s1390_s16, 0 }
   0x8   : > { %p112_p3 = scmp.eq.s32.totalorder %s1129_s17, 1  ;;  %p1130_p5 = scmp.ge.s32.totalorder %s1338_s15, 1 }
   0x9   : > { %p1399_p4 = por %p2311_p1, %p40_p0  ;;  %p119_p7 = scmp.lt.s32.totalorder %s1338_s15, 3 }
   0xa   : > { %p1404_p6 = por %p112_p3, %p40_p0  ;;  %s1340_s21 = smov [#allocation6]  }
   0xb   : > { %s2336_s18 = scalar_select %p1399_p4, 1, 0 }
   0xc   : > { %s2337_s19 = scalar_select %p1404_p6, 1, 0 }
   0xd   : > { %p1409_p8 = pnand %p1130_p5, %p119_p7  ;;  %s131_s22 = sshll.u32 %s1340_s21, 4  ;;  %s1413_s22 = int_to_ptr.vmem [resolvable:$true] %s131_s22 }
   0xe   : > { %s1425_s24 = sadd.s32 1, %s1338_s15   ;;  %s27_s25 = sadd.s32 1, %s1334_s14 }
   0xf   : > { %s2338_s20 = scalar_select %p1409_p8, 1, 0 }
  0x10   : > { %p1155_p9 = pneg %p1409_p8  ;;  %s24_s26 = ssub.s32 %s1338_s15, %s1425_s24 }
  0x11   : > { %s1210_s29 = scalar_lea.hbm %s2308_s1, 1024 }
  0x12   : > { %p1420_p11 = pnand %p1155_p9, %p2311_p1  ;;  %p1211_p12 = scmp.ne.s32.totalorder %s2308_s1, %s1210_s29 }
  0x13   : > { %p1217_p5 = scmp.lt.u32.totalorder %s1210_s29, %s2308_s1 }
  0x14   : > { %p1212_p13 = pneg %p1420_p11 }
  0x16   : > { %p1213_p0 = pnand %p1212_p13, %p1211_p12 }
  0x18   : > { %p1214_p3 = pneg %p1213_p0 }
  0x1a   : > { %p1219_p7 = pnand %p1217_p5, %p1214_p3 }
  0x1c   : > { %1222 = shalt.err (!%p1219_p7)
}
  0x1d   : > { %s1223_s7 = scalar_lea.vmem %s1413_s22, 1024  ;;  %p1231_p2 = scmp.lt.s32.totalorder %s1413_s22, %s1413_s22 }
  0x1e   : > { %p1224_p9 = scmp.ne.s32.totalorder %s1413_s22, %s1223_s7  ;;  %p1232_p6 = scmp.lt.s32.totalorder %s1223_s7, %s1223_s7 }
  0x20   : > { %p1226_p10 = pnand %p1224_p9, %p1212_p13  ;;  %p1233_p4 = por %p1232_p6, %p1231_p2 }
  0x22   : > { %p1227_p1 = pneg %p1226_p10 }
  0x24   : > { %p1234_p8 = pnand %p1233_p4, %p1227_p1 }
  0x26   : > { %1237 = shalt.err (!%p1234_p8)
}
  0x27   : > { %s1341_s8 = smov 512   ;;  %s1342_s9 = smov 32  }
  0x28   : > { %1158 = dma.hbm_to_vmem [thread:$0]  (!%p1420_p11), %s2308_s1, 1024, %s1413_s22, [#allocation7], %s1341_s8, %s1341_s8, %s1342_s9  }
  0x29   : > { %p25_p1 = scmp.eq.s32.totalorder %s24_s26, 0  ;;  %p34_p2 = scmp.ne.s32.totalorder %s1334_s14, %s1330_s13 }
  0x2a   : > { %p35_p4 = scmp.eq.s32.totalorder %s1338_s15, 0  ;;  %p1168_p6 = scmp.lt.s32.totalorder %s1338_s15, 2 }
  0x2b   : > { %s1459_s17 = scalar_select %p25_p1, %s1334_s14, %s27_s25  }
  0x2c   : > { %p36_p8 = por %p35_p4, %p34_p2  ;;  %p2340_p10 = scmp.eq.s32.totalorder %s1390_s16, 1 }
  0x2d   : > { %s148_s23 = sand.u32 1, %s1334_s14   ;;  %s1145_s27 = sshll.u32 %s1338_s15, 10 }
  0x2e   : > { %p1463_p12 = por %p2340_p10, %p34_p2  ;;  %s1133_s28 = sshll.u32 %s148_s23, 6 }
  0x2f   : > { %s1472_s4 = scalar_lea.hbm %s2307_s0, %s1145_s27  ;;  %s152_s22 = scalar_lea.vmem [#allocation3], %s1133_s28 }
  0x30   : > { %s159_s25 = sshll.u32 %s152_s22, 4  ;;  %p1474_p11 = pnand %p1168_p6, %p36_p8  ;;  %s1478_s25 = int_to_ptr.vmem [resolvable:$true] %s159_s25 }
  0x31   : > { %s1480_s5 = scalar_lea.sflag [#allocation4], %s148_s23  ;;  %s1238_s6 = scalar_lea.hbm %s1472_s4, 1024 }
  0x32   : > { %p1239_p13 = scmp.ne.s32.totalorder %s1472_s4, %s1238_s6  ;;  %p1240_p0 = pneg %p1474_p11 }
  0x33   : > { %s1243_s11 = scalar_lea.hbm %s2307_s0, 2048  ;;  %p1244_p7 = scmp.lt.u32.totalorder %s1472_s4, %s2307_s0 }
  0x34   : > { %p1241_p3 = pnand %p1240_p0, %p1239_p13  ;;  %p1245_p9 = scmp.lt.u32.totalorder %s1243_s11, %s1238_s6 }
  0x35   : > { %p1247_p2 = scmp.lt.u32.totalorder %s1238_s6, %s1472_s4 }
  0x36   : > { %p1242_p5 = pneg %p1241_p3  ;;  %p1246_p1 = por %p1245_p9, %p1244_p7 }
  0x38   : > { %p1248_p4 = por %p1247_p2, %p1246_p1 }
  0x3a   : > { %p1249_p6 = pnand %p1248_p4, %p1242_p5 }
  0x3c   : > { %1252 = shalt.err (!%p1249_p6)
}
  0x3d   : > { %s1253_s23 = scalar_lea.vmem %s1478_s25, 1024  ;;  %s1343_s29 = smov [#allocation3]  }
  0x3e   : > { %p1254_p8 = scmp.ne.s32.totalorder %s1478_s25, %s1253_s23  ;;  %s1258_s30 = sshll.u32 %s1343_s29, 4  ;;  %s1259_s30 = int_to_ptr.vmem [resolvable:$false] %s1258_s30 }
  0x3f   : > { %s1260_s22 = scalar_lea.vmem %s1259_s30, 2048  ;;  %p1261_p3 = scmp.lt.s32.totalorder %s1478_s25, %s1259_s30 }
  0x40   : > { %p1256_p10 = pnand %p1254_p8, %p1240_p0  ;;  %p1262_p7 = scmp.lt.s32.totalorder %s1260_s22, %s1253_s23 }
  0x42   : > { %p1257_p13 = pneg %p1256_p10  ;;  %p1263_p9 = por %p1262_p7, %p1261_p3 }
  0x44   : > { %p1264_p1 = pnand %p1263_p9, %p1257_p13 }
  0x46   : > { %1267 = shalt.err (!%p1264_p1)
}
  0x47   : > { %1162 = dma.hbm_to_vmem [thread:$0]  (!%p1474_p11), %s1472_s4, 1024, %s1478_s25, %s1480_s5, %s1341_s8, %s1341_s8, %s1342_s9  }
  0x48   : > { %p2343_p0 = scmp.ne.s32.totalorder %s2338_s20, 0 }
  0x4a   : > { %171 = sbr.rel (%p2343_p0) target bundleno = 289 (0x121), region = 32 }
  0x51   : > { %s1514_s6 = sand.u32 1, %s1330_s13   ;;  %p2344_p5 = scmp.ne.s32.totalorder %s2336_s18, 0 }
  0x52   : > { %s1137_s7 = sshll.u32 %s1514_s6, 6  ;;  %s174_s10 = scalar_lea.sflag [#allocation4], %s1514_s6 }
  0x53   : > { %s1520_s26 = scalar_lea.vmem [#allocation3], %s1137_s7 }
  0x54   : > { %1313 = dma.done.wait (%p2344_p5), %s174_s10, 1024  }
  0x55   : > { %1315 = vsyncadd (%p2344_p5), %s174_s10, 4294966272  ;;  %p2345_p11 = scmp.eq.s32.totalorder %s1390_s16, 0 }
  0x57   : > { %1317 = dma.done.wait (%p2345_p11), [#allocation7], 1024   ;;  %p2346_p2 = pmov %p2345_p11 }
  0x58   : > { %v207_v0 = vlaneseq  ;;  %v2314_v1 = vmov 0.0   ;;  %v1545_v6 = vld [vmem:[%s1520_s26 + $0x18] sm:$0xff]  ;;  %v1552_v8 = vld [vmem:[%s2309_s2] sm:$0xf]  ;;  %s1345_s8 = smov 32   ;;  %v1597_v24 = vld [vmem:[%s1520_s26 + $0x28] sm:$0xff] }
  0x59   : > { %1319 = vsyncadd (%p2346_p2), [#allocation7], 4294966272  ;;  %205 = vst [vmem:[#allocation2 + $0x7] ss:$8 sm:$0xf] %v2314_v1  ;;  %266 = vrot.lane.b32.xlu1 %v1545_v6, %s1345_s8  ;;  %v1574_v17 = vld [vmem:[%s1520_s26] sm:$0xff] }
  0x5a   : > { %206 = vst [vmem:[#allocation2 + $0x7] ss:$8 sm:$0xf0] %v2314_v1  ;;  %215 = vst [vmem:[#allocation2 + $0x120] ss:$8 sm:$0xf] %v2314_v1  ;;  %254 = vrot.lane.b32.xlu0 %v1574_v17, %s1345_s8 }
  0x5b   : > { %216 = vst [vmem:[#allocation2 + $0x120] ss:$8 sm:$0xf0] %v2314_v1  ;;  %v330_v2 = vshrl.u32 %v207_v0, 7  ;;  %vm209_vm0 = vcmp.lt.s32.totalorder %v207_v0, 512  ;;  %249 = vst [vmem:[#allocation2 + $0x78] sm:$0xff] %v1545_v6 }
  0x5c   : > { %212 = vst.msk [vmem:[#allocation2 + $0x47] ss:$8 sm:$0xf] %vm209_vm0, %v2314_v1  ;;  %218 = vst.msk [vmem:[#allocation2 + $0x160] ss:$8 sm:$0xf] %vm209_vm0, %v2314_v1 }
  0x5d   : > { %v1538_v3 = vsub.s32 3, %v330_v2  ;;  %v1540_v4 = vsub.s32 0, %v330_v2  ;;  %v1542_v5 = vsub.s32 1, %v330_v2  ;;  %v1547_v7 = vld [vmem:[#allocation6 + $0x1] ss:$8 sm:$0xf] }
  0x5e   : > { %v228_v9 = vld [vmem:[#allocation6 + $0x4] ss:$8 sm:$0xf]  ;;  %v234_v10 = vld [vmem:[#allocation6 + $0x7] ss:$8 sm:$0xf] }
  0x5f   : > { %v373_v11 = vrot.slane %v1552_v8, %v1538_v3  ;;  %v1561_v12 = vrot.slane %v1547_v7, %v1538_v3  ;;  %v361_v13 = vrot.slane %v1552_v8, %v1540_v4  ;;  %v1567_v14 = vrot.slane %v1547_v7, %v1540_v4  ;;  %v1581_v20 = vld [vmem:[%s1520_s26 + $0x38] sm:$0xff]  ;;  %v242_v21 = vld [vmem:[%s1520_s26 + $0x20] sm:$0xff]  ;;  %246 = vst [vmem:[#allocation2 + $0x60] sm:$0xff] %v1574_v17  ;;  %v1601_v26 = vld [vmem:[%s1520_s26 + $0x8] sm:$0xff]  ;;  %s1346_s9 = smov 96   ;;  %s2191_s4 = scalar_lea.vmem [#allocation8], %s1137_s7 }
  0x60   : > { %v344_v15 = vrot.slane %v228_v9, %v1538_v3  ;;  %v1571_v16 = vrot.slane %v234_v10, %v1538_v3  ;;  %v332_v18 = vrot.slane %v228_v9, %v1540_v4  ;;  %v1578_v19 = vrot.slane %v234_v10, %v1540_v4  ;;  %253 = vst [vmem:[#allocation2 + $0xd8] sm:$0xff] %v1581_v20  ;;  %v1604_v27 = vld [vmem:[%s1520_s26 + $0x30] sm:$0xff]  ;;  %s1146_s25 = sshll.u32 %s1390_s16, 10  ;;  %s1046_s5 = sshll.u32 %s2191_s4, 4  ;;  %s2258_s5 = int_to_ptr.vmem [resolvable:$true] %s1046_s5 }
  0x61   : > { %v1586_v22 = vmul.f32 %v1561_v12, %v1545_v6  ;;  %v1593_v23 = vmul.f32 %v1567_v14, %v1574_v17  ;;  %250 = vst [vmem:[#allocation2 + $0xc0] sm:$0xff] %v242_v21  ;;  %v336_v25 = vrot.slane %v228_v9, %v1542_v5  ;;  %251 = vst [vmem:[#allocation2 + $0xc8] sm:$0xff] %v1597_v24  ;;  %v1617_v32 = vld [vmem:[%s1520_s26 + $0x10] sm:$0xff]  ;;  %268 = vrot.lane.b32.xlu1 %v1581_v20, %s1345_s8  ;;  %vm801_vm1 = vcmask 1046528   ;;  %s2256_s27 = scalar_lea.hbm %s2310_s3, %s1146_s25  ;;  %s1033_s28 = scalar_lea.sflag [#allocation5], %s1514_s6 }
  0x62   : > { %v352_v28 = vmul.f32 %v344_v15, %v1545_v6  ;;  %v349_v29 = vmul.f32 %v332_v18, %v1574_v17  ;;  %v356_v30 = vmul.f32 %v344_v15, %v1581_v20  ;;  %v1611_v31 = vmul.f32 %v1571_v16, %v1581_v20  ;;  %247 = vst [vmem:[#allocation2 + $0x68] sm:$0xff] %v1601_v26  ;;  %v841_v43 = vld [vmem:[#allocation2 + $0x78] sm:$0xfe]  ;;  %s1268_s23 = scalar_lea.vmem %s2258_s5, 1024  ;;  %s1347_s29 = smov [#allocation8]  }
  0x63   : > { %252 = vst [vmem:[#allocation2 + $0xd0] sm:$0xff] %v1604_v27  ;;  %v353_v33 = vmul.f32 %v332_v18, %v242_v21  ;;  %v1622_v34 = vmul.f32 %v1578_v19, %v242_v21  ;;  %v1624_v35 = vsub.s32 2, %v330_v2  ;;  %248 = vst [vmem:[#allocation2 + $0x70] sm:$0xff] %v1617_v32  ;;  %v365_v39 = vrot.slane %v1552_v8, %v1542_v5  ;;  %p1269_p4 = scmp.ne.s32.totalorder %s2258_s5, %s1268_s23  ;;  %s1272_s30 = sshll.u32 %s1347_s29, 4  ;;  %s1273_s30 = int_to_ptr.vmem [resolvable:$false] %s1272_s30 }
  0x64   : > { %v1627_v36 = vadd.f32 %v373_v11, %v352_v28  ;;  %v1629_v37 = vadd.f32 %v361_v13, %v349_v29  ;;  %v1631_v38 = vadd.f32 %v373_v11, %v356_v30  ;;  %256 = vrot.lane.b32.xlu0 %v242_v21, %s1345_s8  ;;  %v354_v41 = vmul.f32 %v336_v25, %v1597_v24  ;;  %v480_v29 = vld [vmem:[#allocation2] sm:$0x80]  ;;  %s1274_s22 = scalar_lea.vmem %s1273_s30, 2048  ;;  %p1275_p10 = scmp.lt.s32.totalorder %s2258_s5, %s1273_s30 }
  0x65   : > { %v1636_v40 = vadd.f32 %v361_v13, %v353_v33  ;;  %v1641_v42 = vrot.slane %v1547_v7, %v1542_v5  ;;  %v1644_v44 = vrot.slane %v234_v10, %v1542_v5  ;;  %v350_v45 = vmul.f32 %v336_v25, %v1601_v26  ;;  %260 = vrot.lane.b32.xlu1 %v1597_v24, %s1345_s8  ;;  %p1270_p6 = pnand %p1269_p4, %p1463_p12  ;;  %p1276_p13 = scmp.lt.s32.totalorder %s1274_s22, %s1268_s23 }
  0x66   : > { %v340_v46 = vrot.slane %v228_v9, %v1624_v35  ;;  %v874_v47 = vmul.f32 %v1571_v16, %v841_v43  ;;  %v905_v48 = vrot.slane %v1611_v31, 1  ;;  %v1652_v49 = vadd.f32 %v365_v39, %v354_v41  ;;  %v483_v9 = vld [vmem:[#allocation2 + $0x18] sm:$0x80] }
  0x67   : > { %v1656_v50 = vmul.f32 %v1641_v42, %v1601_v26  ;;  %v1660_v51 = vmul.f32 %v1644_v44, %v1597_v24  ;;  %v1662_v52 = vadd.f32 %v365_v39, %v350_v45  ;;  %v491_v55 = vld [vmem:[#allocation2 + $0xd8] sm:$0x7f]  ;;  %v504_v56 = vrot.slane %v1547_v7, %v1624_v35  ;;  %p1271_p8 = pneg %p1270_p6  ;;  %p1277_p3 = por %p1276_p13, %p1275_p10 }
  0x68   : > { %v355_v53 = vmul.f32 %v340_v46, %v1604_v27  ;;  %v904_v54 = vrot.slane %v874_v47, 1  ;;  %258 = vrot.lane.b32.xlu0 %v1601_v26, %s1345_s8  ;;  %v1670_v57 = vrot.slane %v234_v10, %v1624_v35  ;;  %v369_v58 = vrot.slane %v1552_v8, %v1624_v35  ;;  %v489_v11 = vld [vmem:[#allocation2 + $0xc8] sm:$0x7f]  ;;  %v488_v15 = vld [vmem:[#allocation2 + $0xc0] sm:$0x7f] }
  0x69   : > { %264 = vrot.lane.b32.xlu1 %v1604_v27, %s1345_s8  ;;  %v524_v60 = vmul.f32 %v1561_v12, %v491_v55  ;;  %v351_v63 = vmul.f32 %v340_v46, %v1617_v32  ;;  %v519_v2 = vmul.f32 %v504_v56, %v1617_v32  ;;  %v547_v10 = vrot.slane %v1586_v22, 7  ;;  %v482_v46 = vld [vmem:[#allocation2 + $0x10] sm:$0x80]  ;;  %p1278_p7 = pnand %p1277_p3, %p1271_p8 }
  0x6a   : > { %v1677_v59 = vsel %vm801_vm1, %v904_v54, %v905_v48  ;;  %v1682_v61 = vadd.f32 %v369_v58, %v355_v53  ;;  %v1686_v62 = vmul.f32 %v1670_v57, %v1604_v27  ;;  %v490_v13 = vld [vmem:[#allocation2 + $0xd0] sm:$0x7f]  ;;  %vm443_vm2 = vcmask 1040384  }
  0x6b   : > { %2347 = vst [vmem:[#allocation12_spill] sm:$0xff] %v1677_v59  ;;  %v1692_v7 = vadd.f32 %v369_v58, %v351_v63  ;;  %v555_v8 = vrot.slane %v524_v60, 7  ;;  %v516_v18 = vmul.f32 %v1561_v12, %v483_v9  ;;  %v523_v28 = vmul.f32 %v504_v56, %v490_v13  ;;  %v840_v60 = vld [vmem:[#allocation2 + $0x70] sm:$0xfe]  ;;  %v941_v59 = vld [vmem:[#allocation2 + $0x170] sm:$0x1] }
  0x6c   : > { %262 = vrot.lane.b32.xlu0 %v1617_v32, %s1345_s8  ;;  %v521_v30 = vmul.f32 %v1567_v14, %v488_v15  ;;  %v538_v12 = vrot.slane %v1593_v23, 7  ;;  %v541_v47 = vrot.slane %v1656_v50, 7  ;;  %v544_v53 = vrot.slane %v519_v2, 7  ;;  %v839_v50 = vld [vmem:[#allocation2 + $0x68] sm:$0xfe] }
  0x6d   : > { %283 = vrot.lane.b32.xlu1 %v242_v21, %s1346_s9  ;;  %v1702_v25 = vsel %vm443_vm2, %v547_v10, %v555_v8  ;;  %v838_v21 = vld [vmem:[#allocation2 + $0x60] sm:$0xfe]  ;;  %v546_v22 = vrot.slane %v516_v18, 7  ;;  %v553_v41 = vrot.slane %v523_v28, 7  ;;  %v896_v54 = vrot.slane %v1622_v34, 1 }
  0x6e   : > { %v871_v33 = vmul.f32 %v1578_v19, %v838_v21  ;;  %v549_v43 = vrot.slane %v521_v30, 7  ;;  %v515_v55 = vmul.f32 %v504_v56, %v482_v46  ;;  %v872_v8 = vmul.f32 %v1644_v44, %v839_v50  ;;  %v847_v28 = vld [vmem:[#allocation2 + $0x128] sm:$0x1]  ;;  %v386_v46 = vld [vmem:[#allocation2 + $0x20] sm:$0x80] }
  0x6f   : > { %v1732_v58 = vsel %vm443_vm2, %v544_v53, %v553_v41  ;;  %v902_v13 = vrot.slane %v1686_v62, 1  ;;  %v753_v50 = vld [vmem:[#allocation2 + $0x148] sm:$0x1]  ;;  %vm322_vm4 = vcmask 261120   ;;  %vm325_vm6 = vcmask 1048320  }
  0x70   : > { %281 = vrot.lane.b32.xlu0 %v1574_v17, %s1346_s9  ;;  %v522_v17 = vmul.f32 %v1641_v42, %v489_v11  ;;  %v895_v23 = vrot.slane %v871_v33, 1  ;;  %2350 = vst [vmem:[#allocation15_spill] sm:$0xff] %v1732_v58  ;;  %v1735_v63 = vsel %vm443_vm2, %v538_v12, %v549_v43  ;;  %v543_v2 = vrot.slane %v515_v55, 7  ;;  %v387_v55 = vld [vmem:[#allocation2 + $0x28] sm:$0x80] }
  0x71   : > { %295 = vrot.lane.b32.xlu1 %v1581_v20, %s1346_s9  ;;  %v1711_v20 = vsel %vm443_vm2, %v546_v22, %v547_v10  ;;  %2351 = vst [vmem:[#allocation16_spill] sm:$0xff] %v1735_v63  ;;  %v899_v10 = vrot.slane %v1660_v51, 1  ;;  %v898_v11 = vrot.slane %v872_v8, 1  ;;  %v848_v22 = vld [vmem:[#allocation2 + $0x130] sm:$0x1] }
  0x72   : > { %v551_v39 = vrot.slane %v522_v17, 7  ;;  %v1746_v9 = vsel %vm443_vm2, %v543_v2, %v544_v53  ;;  %v846_v17 = vld [vmem:[#allocation2 + $0x120] sm:$0x1]  ;;  %v881_v51 = vmul.f32 %v1670_v57, %v848_v22  ;;  %v388_v2 = vld [vmem:[#allocation2 + $0x30] sm:$0x80] }
  0x73   : > { %2354 = vst [vmem:[#allocation19_spill] sm:$0xff] %v1746_v9  ;;  %v1751_v18 = vsel %vm801_vm1, %v898_v11, %v899_v10  ;;  %v879_v30 = vmul.f32 %v1578_v19, %v846_v17  ;;  %v752_v53 = vld [vmem:[#allocation2 + $0x140] sm:$0x1]  ;;  %v389_v8 = vld [vmem:[#allocation2 + $0x38] sm:$0x80] }
  0x74   : > { %293 = vrot.lane.b32.xlu0 %v1545_v6, %s1346_s9  ;;  %v513_v6 = vmul.f32 %v1567_v14, %v480_v29  ;;  %2355 = vst [vmem:[#allocation20_spill] sm:$0xff] %v1751_v18  ;;  %v849_v29 = vld [vmem:[#allocation2 + $0x138] sm:$0x1]  ;;  %v754_v11 = vld [vmem:[#allocation2 + $0x150] sm:$0x1] }
  0x75   : > { %287 = vrot.lane.b32.xlu1 %v1597_v24, %s1346_s9  ;;  %v481_v24 = vld [vmem:[#allocation2 + $0x8] sm:$0x80]  ;;  %v882_v33 = vmul.f32 %v1571_v16, %v849_v29  ;;  %v907_v62 = vrot.slane %v879_v30, 1  ;;  %v232_v16 = vld [vmem:[#allocation6 + $0x6] ss:$8 sm:$0xf] }
  0x76   : > { %v537_v45 = vrot.slane %v513_v6, 7  ;;  %v1787_v31 = vrot.slane %v232_v16, %v1542_v5  ;;  %v1820_v22 = vrot.slane %v232_v16, %v1538_v3  ;;  %v224_v29 = vld [vmem:[#allocation6 + $0x2] ss:$8 sm:$0xf]  ;;  %v940_v58 = vld [vmem:[#allocation2 + $0x168] sm:$0x1] }
  0x77   : > { %v913_v41 = vrot.slane %v882_v33, 1  ;;  %v1761_v43 = vsel %vm801_vm1, %v896_v54, %v907_v62  ;;  %v236_v30 = vld [vmem:[#allocation6 + $0x20] ss:$8 sm:$0xf]  ;;  %v1849_v1 = vrot.slane %v224_v29, %v1540_v4  ;;  %v574_v9 = vld [vmem:[#allocation2 + $0x48] sm:$0x80] }
  0x78   : > { %285 = vrot.lane.b32.xlu0 %v1601_v26, %s1346_s9  ;;  %v1725_v14 = vsel %vm443_vm2, %v537_v45, %v538_v12  ;;  %v514_v26 = vmul.f32 %v1641_v42, %v481_v24  ;;  %v873_v42 = vmul.f32 %v1670_v57, %v840_v60  ;;  %v880_v12 = vmul.f32 %v1644_v44, %v847_v28  ;;  %v220_v44 = vld [vmem:[#allocation6] ss:$8 sm:$0xf] }
  0x79   : > { %291 = vrot.lane.b32.xlu1 %v1604_v27, %s1346_s9  ;;  %2348 = vst [vmem:[#allocation13_spill] sm:$0xff] %v1725_v14  ;;  %v1729_v27 = vsel %vm443_vm2, %v541_v47, %v551_v39  ;;  %v911_v39 = vrot.slane %v881_v51, 1  ;;  %2357 = vst [vmem:[#allocation22_spill] sm:$0xff] %v1761_v43  ;;  %v1772_v19 = vsel %vm801_vm1, %v905_v48, %v913_v41  ;;  %v942_v51 = vld [vmem:[#allocation2 + $0x178] sm:$0x1] }
  0x7a   : > { %2349 = vst [vmem:[#allocation14_spill] sm:$0xff] %v1729_v27  ;;  %v540_v34 = vrot.slane %v514_v26, 7  ;;  %v901_v15 = vrot.slane %v873_v42, 1  ;;  %v909_v6 = vrot.slane %v880_v12, 1  ;;  %2360 = vst [vmem:[#allocation25_spill] sm:$0xff] %v1772_v19  ;;  %v1775_v57 = vrot.slane %v220_v44, %v1540_v4 }
  0x7b   : > { %v1767_v24 = vsel %vm801_vm1, %v902_v13, %v911_v39  ;;  %v1784_v26 = vrot.slane %v220_v44, %v1542_v5  ;;  %v1793_v60 = vrot.slane %v220_v44, %v1624_v35  ;;  %v1817_v28 = vmul.f32 %v1787_v31, %v753_v50  ;;  %v755_v39 = vld [vmem:[#allocation2 + $0x158] sm:$0x1] }
  0x7c   : > { %289 = vrot.lane.b32.xlu0 %v1617_v32, %s1346_s9  ;;  %v1738_v32 = vsel %vm801_vm1, %v895_v23, %v896_v54  ;;  %v1743_v56 = vsel %vm443_vm2, %v540_v34, %v541_v47  ;;  %v1754_v21 = vsel %vm801_vm1, %v901_v15, %v902_v13  ;;  %v1764_v45 = vsel %vm801_vm1, %v899_v10, %v909_v6  ;;  %v226_v23 = vld [vmem:[#allocation6 + $0x3] ss:$8 sm:$0xf] }
  0x7d   : > { %2352 = vst [vmem:[#allocation17_spill] sm:$0xff] %v1738_v32  ;;  %2353 = vst [vmem:[#allocation18_spill] sm:$0xff] %v1743_v56  ;;  %v1778_v47 = vand.u32 127, %v207_v0  ;;  %v1781_v54 = vrot.slane %v232_v16, %v1540_v4  ;;  %v1790_v48 = vmul.f32 %v1775_v57, %v386_v46  ;;  %v1796_v0 = vrot.slane %v220_v44, %v1538_v3 }
  0x7e   : > { %2356 = vst [vmem:[#allocation21_spill] sm:$0xff] %v1754_v21  ;;  %2358 = vst [vmem:[#allocation23_spill] sm:$0xff] %v1764_v45  ;;  %v1805_v10 = vrot.slane %v226_v23, %v1540_v4  ;;  %v1808_v13 = vrot.slane %v232_v16, %v1624_v35  ;;  %v1811_v15 = vmul.f32 %v1784_v26, %v387_v55  ;;  %v576_v16 = vld [vmem:[#allocation2 + $0x58] sm:$0x80]  ;;  %v939_v45 = vld [vmem:[#allocation2 + $0x160] sm:$0x1] }
  0x7f   : > { %2359 = vst [vmem:[#allocation24_spill] sm:$0xff] %v1767_v24  ;;  %v1799_v34 = vmul.f32 %v1781_v54, %v752_v53  ;;  %vm272_vm3 = vcmp.lt.s32.totalorder %v1778_v47, 32  ;;  %v1814_v17 = vrot.slane %v226_v23, %v1542_v5  ;;  %v1824_v33 = vmul.f32 %v1793_v60, %v388_v2 }
  0x80   : > { %v1827_v62 = vmul.f32 %v1796_v0, %v389_v8  ;;  %v1830_v6 = vrot.slane %v226_v23, %v1624_v35  ;;  %v1837_v46 = vrot.slane %v224_v29, %v1538_v3  ;;  %v1840_v53 = vrot.slane %v236_v30, %v1538_v3  ;;  %v230_v8 = vld [vmem:[#allocation6 + $0x5] ss:$8 sm:$0xf] }
  0x81   : > { %v1843_v50 = vrot.slane %v226_v23, %v1538_v3  ;;  %v1846_v2 = vmul.f32 %v1808_v13, %v754_v11  ;;  %v1852_v44 = vrot.slane %v236_v30, %v1540_v4  ;;  %v2363_v24 = vmov 0.0   ;;  %v573_v11 = vld [vmem:[#allocation2 + $0x40] sm:$0x80] }
  0x82   : > { %2361 = vst [vmem:[#allocation26_spill] sm:$0xff] %v1837_v46  ;;  %2362 = vst [vmem:[#allocation27_spill] sm:$0xff] %v1840_v53  ;;  %v1859_v23 = vmul.f32 %v1820_v22, %v755_v39  ;;  %v1862_v18 = vrot.slane %v236_v30, %v1542_v5  ;;  %v1867_v32 = vrot.slane %v224_v29, %v1542_v5  ;;  %vm297_vm5 = vcmp.lt.s32.totalorder %v1778_v47, 96  ;;  %v2396_v47 = vld [vmem:[#allocation14_spill] sm:$0xff] }
  0x83   : > { %v1875_v21 = vmul.f32 %v1837_v46, %v576_v16  ;;  %v1878_v27 = vmul.f32 %v1840_v53, %v942_v51  ;;  %v1881_v43 = vrot.slane %v224_v29, %v1624_v35  ;;  %v1888_v14 = vmul.f32 %v1849_v1, %v573_v11  ;;  %v575_v51 = vld [vmem:[#allocation2 + $0x50] sm:$0x80] }
  0x84   : > { %2364 = vst [vmem:[#allocation28_spill] sm:$0xff] %v1862_v18  ;;  %2365 = vst [vmem:[#allocation29_spill] sm:$0xff] %v1867_v32  ;;  %v1891_v16 = vmul.f32 %v1852_v44, %v939_v45  ;;  %v1899_v63 = vrot.slane %v230_v8, %v1540_v4  ;;  %v1911_v53 = vrot.slane %v230_v8, %v1542_v5 }
  0x85   : > { %2367 = vst [vmem:[#allocation31_spill] sm:$0xff] %v1878_v27  ;;  %2368 = vst [vmem:[#allocation32_spill] sm:$0xff] %v1881_v43 }
  0x86   : > { %2370 = vst [vmem:[#allocation34_spill] sm:$0xff] %v1899_v63 }
  0xcb   : > { %v1801_v42 = vpop.permute.xlu1 %266 }
  0xcc   : > { %v255_v12 = vpop.permute.xlu0 %254 }
  0xcd   : > { %v279_v41 = vsel %vm272_vm3, %v1801_v42, %v255_v12 }
  0xce   : > { %306 = vst [vmem:[#allocation2 + $0x80] sm:$0xff] %v279_v41  ;;  %v1870_v41 = vrot.slane %v236_v30, %v1624_v35  ;;  %v1885_v30 = vrot.slane %v230_v8, %v1538_v3  ;;  %v1902_v3 = vmul.f32 %v1862_v18, %v940_v58  ;;  %v1921_v18 = vmul.f32 %v1881_v43, %v575_v51 }
  0xcf   : > { %323 = vst.msk [vmem:[#allocation2 + $0x80] sm:$0xff] %vm322_vm4, %v2363_v24 }
  0xd0   : > { %2366 = vst [vmem:[#allocation30_spill] sm:$0xff] %v1870_v41  ;;  %2369 = vst [vmem:[#allocation33_spill] sm:$0xff] %v1885_v30  ;;  %v1908_v30 = vmul.f32 %v1867_v32, %v574_v9 }
  0xd1   : > { %2371 = vst [vmem:[#allocation35_spill] sm:$0xff] %v1902_v3  ;;  %2375 = vst [vmem:[#allocation39_spill] sm:$0xff] %v1921_v18 }
  0xd2   : > { %2373 = vst [vmem:[#allocation37_spill] sm:$0xff] %v1908_v30 }
  0xd3   : > { %v269_v55 = vpop.permute.xlu1 %268 }
  0xd6   : > { %v257_v19 = vpop.permute.xlu0 %256  ;;  %v390_v46 = vld [vmem:[#allocation2 + $0x80] sm:$0xff] }
  0xd7   : > { %v280_v39 = vsel %vm272_vm3, %v269_v55, %v257_v19  ;;  %v261_v56 = vpop.permute.xlu1 %260  ;;  %v748_v63 = vld [vmem:[#allocation2 + $0x80] sm:$0xfe] }
  0xd8   : > { %310 = vst [vmem:[#allocation2 + $0xe0] sm:$0xff] %v280_v39  ;;  %v278_v29 = vsel %vm272_vm3, %v257_v19, %v261_v56  ;;  %v1914_v19 = vmul.f32 %v1870_v41, %v941_v59  ;;  %v1927_v41 = vrot.slane %v230_v8, %v1624_v35  ;;  %v1942_v59 = vmul.f32 %v1781_v54, %v748_v63 }
  0xd9   : > { %324 = vst.msk [vmem:[#allocation2 + $0xe0] sm:$0xff] %vm322_vm4, %v2363_v24  ;;  %311 = vst [vmem:[#allocation2 + $0xe8] sm:$0xff] %v278_v29  ;;  %v1905_v11 = vmul.f32 %v1787_v31, %v278_v29  ;;  %v1945_v58 = vmul.f32 %v1814_v17, %v278_v29  ;;  %v2378_v39 = vrot.slane %v1811_v15, 7  ;;  %v1968_v15 = vmul.f32 %v1805_v10, %v390_v46 }
  0xda   : > { %v259_v45 = vpop.permute.xlu0 %258  ;;  %2374 = vst [vmem:[#allocation38_spill] sm:$0xff] %v1914_v19  ;;  %v2379_v19 = vrot.slane %v1817_v28, 1 }
  0xdb   : > { %2372 = vst [vmem:[#allocation36_spill] sm:$0xff] %v1905_v11  ;;  %v277_v4 = vsel %vm272_vm3, %v255_v12, %v259_v45  ;;  %v265_v5 = vpop.permute.xlu1 %264  ;;  %v1930_v12 = vmul.f32 %v1775_v57, %v390_v46  ;;  %2376 = vst [vmem:[#allocation40_spill] sm:$0xff] %v1945_v58  ;;  %v2380_v3 = vrot.slane %v1905_v11, 1 }
  0xdc   : > { %307 = vst [vmem:[#allocation2 + $0x88] sm:$0xff] %v277_v4  ;;  %v424_v9 = vmul.f32 %v1784_v26, %v277_v4  ;;  %v274_v51 = vsel %vm272_vm3, %v265_v5, %v269_v55  ;;  %v276_v43 = vsel %vm272_vm3, %v261_v56, %v265_v5  ;;  %v1948_v55 = vmul.f32 %v1814_v17, %v277_v4 }
  0xdd   : > { %313 = vst [vmem:[#allocation2 + $0xf8] sm:$0xff] %v274_v51  ;;  %312 = vst [vmem:[#allocation2 + $0xf0] sm:$0xff] %v276_v43  ;;  %v1955_v8 = vmul.f32 %v1808_v13, %v276_v43  ;;  %v445_v4 = vrot.slane %v1930_v12, 7 }
  0xde   : > { %v448_v27 = vrot.slane %v424_v9, 7  ;;  %v263_v32 = vpop.permute.xlu0 %262  ;;  %2377 = vst [vmem:[#allocation41_spill] sm:$0xff] %v1948_v55 }
  0xdf   : > { %v1960_v63 = vsel %vm272_vm3, %v263_v32, %v1801_v42  ;;  %v1964_v17 = vsel %vm272_vm3, %v259_v45, %v263_v32  ;;  %v284_v29 = vpop.permute.xlu1 %283  ;;  %v1976_v42 = vsel %vm801_vm1, %v2380_v3, %v2379_v19  ;;  %v1992_v3 = vmul.f32 %v1843_v50, %v274_v51 }
  0xe0   : > { %v394_v9 = vld [vmem:[#allocation2 + $0xe0] sm:$0x7f]  ;;  %v449_v35 = vsel %vm443_vm2, %v2378_v39, %v448_v27  ;;  %v395_v56 = vld [vmem:[#allocation2 + $0xe8] sm:$0x7f]  ;;  %2381 = vst [vmem:[#allocation42_spill] sm:$0xff] %v1976_v42  ;;  %308 = vst [vmem:[#allocation2 + $0x90] sm:$0xff] %v1964_v17  ;;  %v425_v19 = vmul.f32 %v1793_v60, %v1964_v17 }
  0xe1   : > { %v666_v5 = vld [vmem:[#allocation2 + $0xe0] sm:$0xff]  ;;  %v427_v39 = vmul.f32 %v1775_v57, %v394_v9  ;;  %309 = vst [vmem:[#allocation2 + $0x98] sm:$0xff] %v1960_v63  ;;  %v428_v46 = vmul.f32 %v1784_v26, %v395_v56  ;;  %v1985_v45 = vadd.f32 %v449_v35, %v1662_v52  ;;  %v1988_v57 = vmul.f32 %v1820_v22, %v274_v51 }
  0xe2   : > { %v1981_v32 = vmul.f32 %v1781_v54, %v666_v5  ;;  %v282_v28 = vpop.permute.xlu0 %281  ;;  %v426_v54 = vmul.f32 %v1796_v0, %v1960_v63  ;;  %v1999_v52 = vmul.f32 %v1830_v6, %v276_v43  ;;  %v2383_v42 = vrot.slane %v1790_v48, 7 }
  0xe3   : > { %v456_v9 = vrot.slane %v427_v39, 7  ;;  %v458_v26 = vrot.slane %v428_v46, 7  ;;  %v296_v56 = vpop.permute.xlu1 %295  ;;  %v2006_v51 = vmul.f32 %v1805_v10, %v666_v5  ;;  %v749_v11 = vld [vmem:[#allocation2 + $0x88] sm:$0xfe]  ;;  %v451_v55 = vrot.slane %v425_v19, 7 }
  0xe4   : > { %2382 = vst [vmem:[#allocation43_spill] sm:$0xff] %v1999_v52  ;;  %v446_v12 = vsel %vm443_vm2, %v2383_v42, %v445_v4  ;;  %v397_v58 = vld [vmem:[#allocation2 + $0xf8] sm:$0x7f]  ;;  %v454_v18 = vrot.slane %v426_v54, 7  ;;  %v803_v39 = vrot.slane %v1981_v32, 1  ;;  %v812_v35 = vrot.slane %v1988_v57, 1 }
  0xe5   : > { %v459_v46 = vsel %vm443_vm2, %v448_v27, %v458_v26  ;;  %v396_v43 = vld [vmem:[#allocation2 + $0xf0] sm:$0x7f]  ;;  %v430_v52 = vmul.f32 %v1796_v0, %v397_v58  ;;  %v2384_v5 = vrot.slane %v1824_v33, 7  ;;  %v2385_v19 = vrot.slane %v1827_v62, 7 }
  0xe6   : > { %v294_v30 = vpop.permute.xlu0 %293  ;;  %v2013_v48 = vadd.f32 %v459_v46, %v1652_v49  ;;  %v429_v10 = vmul.f32 %v1793_v60, %v396_v43  ;;  %v2023_v27 = vmul.f32 %v1787_v31, %v749_v11  ;;  %v457_v60 = vsel %vm443_vm2, %v445_v4, %v456_v9 }
  0xe7   : > { %v452_v42 = vsel %vm443_vm2, %v2384_v5, %v451_v55  ;;  %v455_v54 = vsel %vm443_vm2, %v2385_v19, %v454_v18  ;;  %v462_v0 = vrot.slane %v430_v52, 7  ;;  %v288_v26 = vpop.permute.xlu1 %287  ;;  %v750_v33 = vld [vmem:[#allocation2 + $0x90] sm:$0xfe]  ;;  %v305_v62 = vsel %vm297_vm5, %v296_v56, %v284_v29 }
  0xe8   : > { %v474_v58 = vadd.f32 %v452_v42, %v1692_v7  ;;  %v475_v57 = vadd.f32 %v455_v54, %v1627_v36  ;;  %v751_v49 = vld [vmem:[#allocation2 + $0x98] sm:$0xfe]  ;;  %v460_v46 = vrot.slane %v429_v10, 7  ;;  %321 = vst [vmem:[#allocation2 + $0x118] sm:$0xff] %v305_v62  ;;  %v304_v36 = vsel %vm297_vm5, %v294_v30, %v282_v28  ;;  %v2392_v62 = vld [vmem:[#allocation34_spill] sm:$0xff] }
  0xe9   : > { %v780_v43 = vmul.f32 %v1820_v22, %v751_v49  ;;  %v463_v5 = vsel %vm443_vm2, %v454_v18, %v462_v0  ;;  %v303_v7 = vsel %vm297_vm5, %v284_v29, %v288_v26  ;;  %v2386_v4 = vrot.slane %v1846_v2, 1  ;;  %327 = vst.msk [vmem:[#allocation2 + $0x118] sm:$0xff] %vm325_vm6, %v2363_v24  ;;  %317 = vst [vmem:[#allocation2 + $0xb8] sm:$0xff] %v304_v36  ;;  %v2390_v49 = vld [vmem:[#allocation13_spill] sm:$0xff] }
  0xea   : > { %v2033_v31 = vadd.f32 %v1711_v20, %v475_v57  ;;  %v286_v11 = vpop.permute.xlu0 %285  ;;  %v2387_v22 = vrot.slane %v1955_v8, 1  ;;  %v2388_v18 = vrot.slane %v1859_v23, 1  ;;  %v461_v52 = vsel %vm443_vm2, %v451_v55, %v460_v46  ;;  %318 = vst [vmem:[#allocation2 + $0x100] sm:$0xff] %v303_v7  ;;  %326 = vst.msk [vmem:[#allocation2 + $0xb8] sm:$0xff] %vm325_vm6, %v2363_v24 }
  0xeb   : > { %v479_v10 = vadd.f32 %v463_v5, %v1631_v38  ;;  %v2056_v2 = vadd.f32 %v461_v52, %v1682_v61  ;;  %v2059_v29 = vmul.f32 %v1808_v13, %v750_v33  ;;  %v2064_v23 = vmul.f32 %v1852_v44, %v303_v7  ;;  %v292_v55 = vpop.permute.xlu1 %291 }
  0xec   : > { %v2044_v9 = vsel %vm801_vm1, %v2387_v22, %v2386_v4  ;;  %v2049_v20 = vsel %vm801_vm1, %v812_v35, %v2388_v18  ;;  %v302_v38 = vsel %vm297_vm5, %v282_v28, %v286_v11  ;;  %v811_v19 = vrot.slane %v780_v43, 1  ;;  %v2397_v18 = vld [vmem:[#allocation26_spill] sm:$0xff] }
  0xed   : > { %v2069_v42 = vadd.f32 %v1702_v25, %v479_v10  ;;  %314 = vst [vmem:[#allocation2 + $0xa0] sm:$0xff] %v302_v38  ;;  %v472_v61 = vadd.f32 %v446_v12, %v1629_v37  ;;  %v476_v13 = vadd.f32 %v457_v60, %v1636_v40  ;;  %v2389_v54 = vrot.slane %v1799_v34, 1  ;;  %v2391_v12 = vld [vmem:[#allocation16_spill] sm:$0xff] }
  0xee   : > { %v805_v0 = vrot.slane %v2023_v27, 1  ;;  %v2083_v28 = vmul.f32 %v1830_v6, %v1964_v17  ;;  %v610_v25 = vmul.f32 %v1849_v1, %v302_v38  ;;  %v290_v57 = vpop.permute.xlu0 %289  ;;  %v299_v34 = vsel %vm297_vm5, %v292_v55, %v296_v56 }
  0xef   : > { %v2078_v24 = vsel %vm801_vm1, %v803_v39, %v2389_v54  ;;  %v565_v37 = vadd.f32 %v2390_v49, %v472_v61  ;;  %v569_v40 = vadd.f32 %v2391_v12, %v476_v13  ;;  %v301_v60 = vsel %vm297_vm5, %v288_v26, %v292_v55  ;;  %320 = vst [vmem:[#allocation2 + $0x110] sm:$0xff] %v299_v34 }
  0xf0   : > { %v694_v46 = vmul.f32 %v1843_v50, %v1960_v63  ;;  %v808_v33 = vrot.slane %v2059_v29, 1  ;;  %v989_v6 = vrot.slane %v2064_v23, 1  ;;  %v631_v17 = vrot.slane %v610_v25, 7  ;;  %319 = vst [vmem:[#allocation2 + $0x108] sm:$0xff] %v301_v60  ;;  %v584_v50 = vld [vmem:[#allocation2 + $0x118] sm:$0x7f] }
  0xf1   : > { %v2097_v43 = vsel %vm801_vm1, %v811_v19, %v812_v35  ;;  %v736_v5 = vmul.f32 %v2392_v62, %v303_v7  ;;  %v2102_v56 = vsel %vm297_vm5, %v290_v57, %v294_v30  ;;  %v2106_v26 = vsel %vm297_vm5, %v286_v11, %v290_v57  ;;  %v581_v63 = vld [vmem:[#allocation2 + $0x100] sm:$0x7f]  ;;  %v2394_v35 = vld [vmem:[#allocation18_spill] sm:$0xff]  ;;  %v2395_v30 = vld [vmem:[#allocation19_spill] sm:$0xff] }
  0xf2   : > { %v2393_v36 = vrot.slane %v1888_v14, 7  ;;  %315 = vst [vmem:[#allocation2 + $0xa8] sm:$0xff] %v2106_v26  ;;  %316 = vst [vmem:[#allocation2 + $0xb0] sm:$0xff] %v2102_v56  ;;  %v2115_v7 = vadd.f32 %v2394_v35, %v1985_v45  ;;  %v2118_v22 = vadd.f32 %v2395_v30, %v474_v58  ;;  %v2122_v11 = vadd.f32 %v2396_v47, %v2013_v48  ;;  %v580_v14 = vld [vmem:[#allocation2 + $0xb8] sm:$0xff] }
  0xf3   : > { %v617_v52 = vmul.f32 %v2397_v18, %v584_v50  ;;  %v614_v10 = vmul.f32 %v1849_v1, %v581_v63  ;;  %v732_v55 = vmul.f32 %v2392_v62, %v302_v38  ;;  %v2398_v19 = vrot.slane %v1942_v59, 1  ;;  %v710_v61 = vld [vmem:[#allocation2 + $0x118] sm:$0xff]  ;;  %v2401_v50 = vld [vmem:[#allocation28_spill] sm:$0xff] }
  0xf4   : > { %v632_v4 = vsel %vm443_vm2, %v2393_v36, %v631_v17  ;;  %v613_v58 = vmul.f32 %v2397_v18, %v580_v14  ;;  %v934_v13 = vld [vmem:[#allocation2 + $0xb8] sm:$0xfe]  ;;  %v2399_v48 = vrot.slane %v1891_v16, 1  ;;  %v931_v25 = vld [vmem:[#allocation2 + $0xa0] sm:$0xfe]  ;;  %v2141_v38 = vmul.f32 %v1911_v53, %v301_v60  ;;  %v2403_v18 = vld [vmem:[#allocation30_spill] sm:$0xff] }
  0xf5   : > { %v804_v45 = vsel %vm801_vm1, %v2398_v19, %v803_v39  ;;  %v658_v1 = vadd.f32 %v632_v4, %v565_v37  ;;  %v648_v32 = vrot.slane %v617_v52, 7  ;;  %v2400_v59 = vld [vmem:[#allocation27_spill] sm:$0xff]  ;;  %v642_v39 = vrot.slane %v614_v10, 7  ;;  %v2402_v37 = vld [vmem:[#allocation33_spill] sm:$0xff] }
  0xf6   : > { %v2138_v54 = vsel %vm801_vm1, %v989_v6, %v2399_v48  ;;  %v971_v57 = vmul.f32 %v2400_v59, %v710_v61  ;;  %v2145_v49 = vmul.f32 %v1927_v41, %v299_v34  ;;  %v640_v12 = vrot.slane %v613_v58, 7  ;;  %v583_v47 = vld [vmem:[#allocation2 + $0x110] sm:$0x7f]  ;;  %v2427_v29 = vld [vmem:[#allocation35_spill] sm:$0xff] }
  0xf7   : > { %v699_v16 = vadd.f32 %v1968_v15, %v658_v1  ;;  %v964_v62 = vmul.f32 %v1852_v44, %v931_v25  ;;  %v2150_v63 = vmul.f32 %v2401_v50, %v301_v60  ;;  %v739_v36 = vmul.f32 %v2402_v37, %v710_v61  ;;  %v582_v30 = vld [vmem:[#allocation2 + $0x108] sm:$0x7f] }
  0xf8   : > { %v967_v4 = vmul.f32 %v2400_v59, %v934_v13  ;;  %v643_v35 = vsel %vm443_vm2, %v631_v17, %v642_v39  ;;  %v2156_v52 = vmul.f32 %v2403_v18, %v299_v34  ;;  %v2404_v10 = vrot.slane %v1875_v21, 7  ;;  %v2405_v34 = vld [vmem:[#allocation29_spill] sm:$0xff]  ;;  %v2406_v59 = vld [vmem:[#allocation32_spill] sm:$0xff] }
  0xf9   : > { %v649_v44 = vsel %vm443_vm2, %v640_v12, %v648_v32  ;;  %v735_v60 = vmul.f32 %v2402_v37, %v580_v14  ;;  %v662_v19 = vadd.f32 %v643_v35, %v569_v40  ;;  %v998_v58 = vrot.slane %v971_v57, 1 }
  0xfa   : > { %v641_v15 = vsel %vm443_vm2, %v2404_v10, %v640_v12  ;;  %v665_v13 = vadd.f32 %v649_v44, %v2069_v42  ;;  %v740_v17 = vadd.f32 %v732_v55, %v699_v16  ;;  %v988_v1 = vrot.slane %v964_v62, 1 }
  0xfb   : > { %v661_v61 = vadd.f32 %v641_v15, %v2033_v31  ;;  %v703_v48 = vadd.f32 %v2006_v51, %v662_v19  ;;  %v615_v25 = vmul.f32 %v2405_v34, %v582_v30  ;;  %v616_v21 = vmul.f32 %v2406_v59, %v583_v47  ;;  %v2407_v31 = vld [vmem:[#allocation15_spill] sm:$0xff]  ;;  %v2408_v51 = vld [vmem:[#allocation17_spill] sm:$0xff] }
  0xfc   : > { %v706_v10 = vadd.f32 %v1992_v3, %v665_v13  ;;  %v997_v32 = vrot.slane %v967_v4, 1  ;;  %v830_v12 = vadd.f32 %v804_v45, %v740_v17  ;;  %v992_v57 = vrot.slane %v2150_v63, 1  ;;  %v2409_v30 = vld [vmem:[#allocation31_spill] sm:$0xff] }
  0xfd   : > { %v702_v39 = vadd.f32 %v694_v46, %v661_v61  ;;  %v744_v14 = vadd.f32 %v736_v5, %v703_v48  ;;  %v644_v40 = vrot.slane %v615_v25, 7  ;;  %v571_v42 = vadd.f32 %v2407_v31, %v2056_v2  ;;  %v2414_v17 = vld [vmem:[#allocation39_spill] sm:$0xff]  ;;  %v2418_v31 = vld [vmem:[#allocation22_spill] sm:$0xff] }
  0xfe   : > { %v747_v16 = vadd.f32 %v739_v36, %v706_v10  ;;  %v923_v62 = vadd.f32 %v2408_v51, %v830_v12  ;;  %v611_v37 = vmul.f32 %v2405_v34, %v2106_v26  ;;  %v990_v3 = vsel %vm801_vm1, %v988_v1, %v989_v6  ;;  %v932_v6 = vld [vmem:[#allocation2 + $0xa8] sm:$0xfe] }
  0xff   : > { %v743_v55 = vadd.f32 %v735_v60, %v702_v39  ;;  %v834_v46 = vadd.f32 %v2078_v24, %v744_v14  ;;  %v646_v5 = vrot.slane %v616_v21, 7  ;;  %v612_v45 = vmul.f32 %v2406_v59, %v2102_v56  ;;  %v2411_v60 = vld [vmem:[#allocation12_spill] sm:$0xff]  ;;  %v2416_v12 = vld [vmem:[#allocation41_spill] sm:$0xff] }
 0x100   : > { %v837_v36 = vadd.f32 %v2049_v20, %v747_v16  ;;  %v1016_v4 = vadd.f32 %v990_v3, %v923_v62  ;;  %v634_v35 = vrot.slane %v611_v37, 7  ;;  %v2410_v47 = vrot.slane %v2409_v30, 1  ;;  %v2412_v20 = vld [vmem:[#allocation37_spill] sm:$0xff]  ;;  %v2421_v37 = vld [vmem:[#allocation36_spill] sm:$0xff]  ;;  %v2426_v30 = vld [vmem:[#allocation23_spill] sm:$0xff] }
 0x101   : > { %v833_v2 = vadd.f32 %v2097_v43, %v743_v55  ;;  %v999_v24 = vsel %vm801_vm1, %v997_v32, %v998_v58  ;;  %v995_v23 = vrot.slane %v2156_v52, 1  ;;  %v637_v44 = vrot.slane %v612_v45, 7  ;;  %v933_v52 = vld [vmem:[#allocation2 + $0xb0] sm:$0xfe] }
 0x102   : > { %v1007_v15 = vsel %vm801_vm1, %v998_v58, %v2410_v47  ;;  %1024 = vst [vmem:[%s2191_s4] sm:$0xff] %v1016_v4  ;;  %v2413_v43 = vrot.slane %v2412_v20, 7  ;;  %v645_v13 = vsel %vm443_vm2, %v634_v35, %v644_v40  ;;  %v733_v58 = vmul.f32 %v1911_v53, %v2106_v26  ;;  %v2417_v53 = vld [vmem:[#allocation40_spill] sm:$0xff] }
 0x103   : > { %v926_v19 = vadd.f32 %v2411_v60, %v833_v2  ;;  %v2415_v48 = vrot.slane %v2414_v17, 7  ;;  %v647_v34 = vsel %vm443_vm2, %v637_v44, %v646_v5  ;;  %v663_v59 = vadd.f32 %v645_v13, %v2122_v11  ;;  %v2431_v60 = vld [vmem:[#allocation38_spill] sm:$0xff] }
 0x104   : > { %v635_v61 = vsel %vm443_vm2, %v2413_v43, %v634_v35  ;;  %v664_v10 = vadd.f32 %v647_v34, %v571_v42  ;;  %v965_v32 = vmul.f32 %v2401_v50, %v932_v6  ;;  %v966_v40 = vmul.f32 %v2403_v18, %v933_v52  ;;  %v2420_v42 = vld [vmem:[#allocation25_spill] sm:$0xff]  ;;  %v2425_v35 = vld [vmem:[#allocation20_spill] sm:$0xff] }
 0x105   : > { %v638_v1 = vsel %vm443_vm2, %v2415_v48, %v637_v44  ;;  %v659_v25 = vadd.f32 %v635_v61, %v2115_v7  ;;  %v1019_v21 = vadd.f32 %v999_v24, %v926_v19  ;;  %v704_v26 = vadd.f32 %v2417_v53, %v663_v59  ;;  %v2419_v7 = vld [vmem:[#allocation43_spill] sm:$0xff]  ;;  %v2430_v44 = vld [vmem:[#allocation24_spill] sm:$0xff] }
 0x106   : > { %v660_v39 = vadd.f32 %v638_v1, %v2118_v22  ;;  %v927_v55 = vadd.f32 %v2418_v31, %v834_v46  ;;  %v705_v11 = vadd.f32 %v2419_v7, %v664_v10  ;;  %v734_v22 = vmul.f32 %v1927_v41, %v2102_v56 }
 0x107   : > { %v700_v14 = vadd.f32 %v2416_v12, %v659_v25  ;;  %1027 = vst [vmem:[%s2191_s4 + $0x18] sm:$0xff] %v1019_v21  ;;  %v930_v51 = vadd.f32 %v2420_v42, %v837_v36  ;;  %v745_v62 = vadd.f32 %v2141_v38, %v704_v26  ;;  %v2422_v18 = vrot.slane %v2421_v37, 1  ;;  %v2424_v36 = vld [vmem:[#allocation42_spill] sm:$0xff] }
 0x108   : > { %v701_v16 = vadd.f32 %v2083_v28, %v660_v39  ;;  %v1020_v28 = vadd.f32 %v2138_v54, %v927_v55  ;;  %v746_v5 = vadd.f32 %v2145_v49, %v705_v11  ;;  %v991_v41 = vrot.slane %v965_v32, 1 }
 0x109   : > { %v741_v50 = vadd.f32 %v733_v58, %v700_v14  ;;  %v807_v46 = vsel %vm801_vm1, %v805_v0, %v2422_v18  ;;  %v1023_v56 = vadd.f32 %v1007_v15, %v930_v51  ;;  %v2423_v45 = vrot.slane %v1955_v8, 1  ;;  %v2429_v15 = vld [vmem:[#allocation21_spill] sm:$0xff] }
 0x10a   : > { %v742_v3 = vadd.f32 %v734_v22, %v701_v16  ;;  %v835_v4 = vadd.f32 %v2424_v36, %v745_v62  ;;  %v994_v27 = vrot.slane %v966_v40, 1  ;;  %1028 = vst [vmem:[%s2191_s4 + $0x20] sm:$0xff] %v1020_v28  ;;  %v836_v54 = vadd.f32 %v2044_v9, %v746_v5 }
 0x10b   : > { %v810_v38 = vsel %vm801_vm1, %v808_v33, %v2423_v45  ;;  %v831_v2 = vadd.f32 %v807_v46, %v741_v50  ;;  %1031 = vst [vmem:[%s2191_s4 + $0x38] sm:$0xff] %v1023_v56  ;;  %v2428_v33 = vrot.slane %v2427_v29, 1  ;;  %v993_v24 = vsel %vm801_vm1, %v991_v41, %v992_v57 }
 0x10c   : > { %v832_v0 = vadd.f32 %v810_v38, %v742_v3  ;;  %v928_v8 = vadd.f32 %v2426_v30, %v835_v4  ;;  %v929_v6 = vadd.f32 %v2430_v44, %v836_v54  ;;  %v2432_v19 = vrot.slane %v2431_v60, 1 }
 0x10d   : > { %v924_v49 = vadd.f32 %v2425_v35, %v831_v2  ;;  %v1003_v47 = vsel %vm801_vm1, %v992_v57, %v2428_v33  ;;  %v996_v43 = vsel %vm801_vm1, %v994_v27, %v995_v23 }
 0x10e   : > { %v925_v9 = vadd.f32 %v2429_v15, %v832_v0  ;;  %v1005_v20 = vsel %vm801_vm1, %v995_v23, %v2432_v19  ;;  %v1021_v13 = vadd.f32 %v1003_v47, %v928_v8 }
 0x10f   : > { %v1017_v61 = vadd.f32 %v993_v24, %v924_v49  ;;  %v1022_v63 = vadd.f32 %v1005_v20, %v929_v6 }
 0x110   : > { %v1018_v58 = vadd.f32 %v996_v43, %v925_v9  ;;  %1029 = vst [vmem:[%s2191_s4 + $0x28] sm:$0xff] %v1021_v13 }
 0x111   : > { %1025 = vst [vmem:[%s2191_s4 + $0x8] sm:$0xff] %v1017_v61  ;;  %1030 = vst [vmem:[%s2191_s4 + $0x30] sm:$0xff] %v1022_v63 }
 0x112   : > { %1026 = vst [vmem:[%s2191_s4 + $0x10] sm:$0xff] %v1018_v58 }
 0x113   : > { %1281 = shalt.err (!%p1278_p7)
}
 0x114   : > { %s1282_s7 = scalar_lea.hbm %s2256_s27, 1024  ;;  %s1286_s18 = scalar_lea.hbm %s2310_s3, 2048 }
 0x115   : > { %p1283_p9 = scmp.ne.s32.totalorder %s2256_s27, %s1282_s7  ;;  %p1287_p5 = scmp.lt.u32.totalorder %s2256_s27, %s2310_s3 }
 0x116   : > { %p1288_p11 = scmp.lt.u32.totalorder %s1286_s18, %s1282_s7  ;;  %p1290_p4 = scmp.lt.u32.totalorder %s1282_s7, %s2256_s27 }
 0x117   : > { %p1284_p1 = pnand %p1283_p9, %p1463_p12 }
 0x118   : > { %p1289_p2 = por %p1288_p11, %p1287_p5 }
 0x119   : > { %p1285_p0 = pneg %p1284_p1 }
 0x11a   : > { %p1291_p6 = por %p1290_p4, %p1289_p2 }
 0x11c   : > { %p1292_p8 = pnand %p1291_p6, %p1285_p0 }
 0x11e   : > { %1295 = shalt.err (!%p1292_p8)
}
 0x11f   : > { %s1348_s4 = smov 512  }
 0x120   : > { %1153 = dma.vmem_to_hbm [thread:$0]  (%p1463_p12), %s2258_s5, 1024, %s2256_s27, %s1033_s28, %s1348_s4, %s1348_s4, %s1345_s8  }
 0x121 PF: > { %s1061_s25 = sand.u32 1, %s1326_s12   ;;  %p2433_p10 = scmp.ne.s32.totalorder %s2337_s19, 0 }
 0x122   : > { %p2434_p13 = scmp.ge.s32.totalorder %s1338_s15, 2  ;;  %s1062_s16 = scalar_lea.sflag [#allocation5], %s1061_s25 }
 0x124   : > { %p1164_p3 = pnand %p2434_p13, %p2433_p10 }
 0x126   : > { %1321 = dma.done.wait (!%p1164_p3), %s1062_s16, 1024  }
 0x127   : > { %1323 = vsyncadd (!%p1164_p3), %s1062_s16, 4294966272  ;;  %p17_p7 = scmp.ge.s32.totalorder %s1425_s24, 4   ;;  %s2435_s12 = smov %s1330_s13 }
 0x128   : > { %s2436_s13 = smov %s1334_s14  ;;  %s2437_s14 = smov %s1459_s17 }
 0x129   : > { %s2438_s15 = smov %s1425_s24  ;;  %19 = sbr.rel (!%p17_p7) target bundleno = 6 (0x6), region = 93 }
 0x130   :  { %1067 = vsyncpa [#allocation4], 1 }
 0x131   :  { %1069 = vsyncpa [#allocation4 + $0x1], 1 }
 0x132   :  { %1070 = vsyncpa [#allocation7], 1 }
 0x133   :  { %1071 = vsyncpa [#allocation5], 1 }
 0x134   :  { %1073 = vsyncpa [#allocation5 + $0x1], 1 }

</bundles_post_ra>
